<compile_context>
chip_gen: v6e
topology: v6e:2x2x1
jax: 0.10.0
libtpu: 0.0.40
codegen_flags: <defaults>
</compile_context>

<pallas_src>
import math
import jax
import jax.numpy as jnp
from jax.experimental import pallas as pl
from jax.experimental.pallas import tpu as pltpu


PACK = 8  # samples packed per lane-row: 8 * 32 input features = 256 lanes


# ----------------------------- Pallas kernel --------------------------------
def clf_kernel(x_ref, w1_ref, b1_ref, w2_ref, b2_ref, wf_ref, bf_ref, out_ref):
    # x tile: (TB, PACK*D_IN) in its HBM dtype (f32 here).  Cast to bf16
    # in-register (no extra HBM pass) so all three matmuls run as single-pass
    # bf16 MXU ops with f32 accumulation.
    x = x_ref[...].astype(jnp.bfloat16)

    # block 1: (SparseLinear * adj + eval BatchNorm) pre-folded into w1/b1, ReLU
    h = jnp.dot(x, w1_ref[...], preferred_element_type=jnp.float32) + b1_ref[...]
    h = jnp.maximum(h, 0.0)

    # block 2
    h = jnp.dot(h.astype(jnp.bfloat16), w2_ref[...],
                preferred_element_type=jnp.float32) + b2_ref[...]
    h = jnp.maximum(h, 0.0)

    # final Linear + 2-class softmax reduced to p1 = sigmoid(z1 - z0).
    z = jnp.dot(h.astype(jnp.bfloat16), wf_ref[...],
                preferred_element_type=jnp.float32) + bf_ref[...]

    # Overflow-free sigmoid: exp(-|z|) never overflows; exp and the approximate
    # reciprocal both run on the otherwise-idle EUP.
    ez = jnp.exp(-jnp.abs(z))
    out_ref[...] = jnp.where(z >= 0, 1.0, ez) * pl.reciprocal(1.0 + ez, approx=True)


# ------------------------------ param folding --------------------------------
def fold_params(p):
    """Fold adjacency masks + eval-mode BatchNorm into weights/biases and
    pre-difference the classifier (softmax_1 == sigmoid(z1 - z0))."""
    w1 = (p["w1_t"] * p["adj1"]) * p["bn1_scale"]            # (d_in, d_h1)
    b1 = p["b1"] * p["bn1_scale"] + p["bn1_shift"]           # (1, d_h1)
    w2 = (p["w2_t"] * p["adj2"]) * p["bn2_scale"]            # (d_h1, d_h2)
    b2 = p["b2"] * p["bn2_scale"] + p["bn2_shift"]           # (1, d_h2)
    wf, bf = p["wf_t"], p["bf"]                              # (d_h2, 2), (1, 2)
    wf1 = (wf[:, 1] - wf[:, 0])[:, None]                     # (d_h2, 1)
    bf1 = (bf[:, 1] - bf[:, 0])[:, None]                     # (1, 1)
    f32 = lambda a: a.astype(jnp.float32)
    return dict(w1=f32(w1), b1=f32(b1), w2=f32(w2), b2=f32(b2),
                wf=f32(wf1), bf=f32(bf1))


def _block_diag(w, pack):
    """(di, do) -> (pack*di, pack*do) with `pack` copies of w on the diagonal."""
    di, do = w.shape
    eye = jnp.eye(pack, dtype=w.dtype)
    return (eye[:, None, :, None] * w[None, :, None, :]).reshape(pack * di, pack * do)


def pack_params(folded, pack=PACK):
    """Block-diagonal bf16 weights + lane-tiled f32 biases for the packed kernel."""
    bf16 = jnp.bfloat16
    return dict(
        pack=pack,
        w1=_block_diag(folded["w1"].astype(bf16), pack),     # (pack*d_in, pack*d_h1)
        b1=jnp.tile(folded["b1"], (1, pack)),                # (1, pack*d_h1)  f32
        w2=_block_diag(folded["w2"].astype(bf16), pack),     # (pack*d_h1, pack*d_h2)
        b2=jnp.tile(folded["b2"], (1, pack)),                # (1, pack*d_h2)  f32
        wf=_block_diag(folded["wf"].astype(bf16), pack),     # (pack*d_h2, pack)
        bf=jnp.tile(folded["bf"], (1, pack)),                # (1, pack)       f32
    )


# ------------------------------ wrapper --------------------------------------
def clinical_benefit_clf(x, packed, *, tile_rows=16384):
    """x: (B, d_in) float32.  packed: output of pack_params.
    Returns (B, 2) f32 softmax probabilities."""
    B, d_in = x.shape
    pack = packed["pack"]

    # Lane-pack the batch: (B, d_in) -> (B/pack, pack*d_in).  Row-major, so the
    # reshape is a free reinterpretation.  Rows are only padded up to the pack
    # quantum (<= 7 rows) or to the 64-row floor for tiny batches; for
    # B % 8 == 0 and B >= 64 (the perf-relevant regime) no pad/copy happens.
    rows = max(pl.cdiv(B, pack) * pack, pack * 8)
    if rows != B:
        x = jnp.pad(x, ((0, rows - B), (0, 0)))
    bp = rows // pack                                        # packed rows
    xp = x.reshape(bp, pack * d_in)

    d1 = packed["w1"].shape[1]                               # pack * d_h1
    d2 = packed["w2"].shape[1]                               # pack * d_h2

    # Packed-row tile: 16K logical rows (2048 packed rows) per step amortizes
    # the ~0.35us grid-step overhead on v5e/v6e/v7x; with packing this is
    # ~11 MiB of VMEM (x f32 2 MiB + out 1 MiB, double-buffered, + temps),
    # safely under the explicit 32 MiB limit on every generation (v7x physical
    # VMEM is 64 MiB).  On v7x keep the grid >= 2 (lower tile_rows if needed)
    # so the "parallel" axis feeds both TensorCores.  Tiles never exceed the
    # packed row count, so only the last block of a large batch is ragged.
    tbp = max(8, min(tile_rows // pack, (bp // 8) * 8))
    n_blocks = pl.cdiv(bp, tbp)
    # Output rows are tile-aligned (a few KiB of over-allocation at most) so
    # every store is in-bounds; the ragged last *input* block's extra rows only
    # produce garbage in rows that are sliced off below.
    out_rows = n_blocks * tbp

    const2 = lambda i: (0, 0)   # folded weights/biases resident across the grid
    out = pl.pallas_call(
        clf_kernel,
        out_shape=jax.ShapeDtypeStruct((out_rows, pack), jnp.float32),
        grid_spec=pltpu.PrefetchScalarGridSpec(
            num_scalar_prefetch=0,
            grid=(n_blocks,),
            in_specs=[
                pl.BlockSpec((tbp, pack * d_in), lambda i: (i, 0)),  # x, batch-tiled
                pl.BlockSpec((pack * d_in, d1), const2),
                pl.BlockSpec((1, d1), const2),
                pl.BlockSpec((d1, d2), const2),
                pl.BlockSpec((1, d2), const2),
                pl.BlockSpec((d2, pack), const2),
                pl.BlockSpec((1, pack), const2),
            ],
            out_specs=pl.BlockSpec((tbp, pack), lambda i: (i, 0)),
        ),
        compiler_params=pltpu.CompilerParams(
            dimension_semantics=("parallel",),        # v7x: shard tiles over 2 TCs
            vmem_limit_bytes=32 * 1024 * 1024,
        ),
    )(xp, packed["w1"], packed["b1"], packed["w2"], packed["b2"],
      packed["wf"], packed["bf"])

    p1 = out[:bp].reshape(rows)[:B]                  # class-1 probability
    return jnp.stack([1.0 - p1, p1], axis=1)         # rows sum to 1 by construction


# ------------------------------ param setup ---------------------------------
def build_params(key, d_in=32, d_h1=16, d_h2=8):
    ks = jax.random.split(key, 12)
    eps = 1e-5

    def kaiming_u(k, shape, fan_in):
        bound = math.sqrt(6.0 / fan_in)   # deterministic synthetic init
        return jax.random.uniform(k, shape, jnp.float32, -bound, bound)

    # sparse adjacency masks (input, output), ~50% sparsity
    adj1 = (jax.random.uniform(ks[0], (d_in, d_h1)) > 0.5).astype(jnp.float32)
    adj2 = (jax.random.uniform(ks[1], (d_h1, d_h2)) > 0.5).astype(jnp.float32)

    # SparseLinear weights: PyTorch shape (out, in); stored transposed (in, out)
    w1_t = kaiming_u(ks[2], (d_in, d_h1), d_in)
    b1 = kaiming_u(ks[3], (1, d_h1), d_in)
    w2_t = kaiming_u(ks[4], (d_h1, d_h2), d_h1)
    b2 = kaiming_u(ks[5], (1, d_h2), d_h1)

    # BatchNorm1d (eval): fold (gamma, beta, running_mean, running_var)
    def bn_fold(kg, kb, km, kv, n):
        gamma = 1.0 + 0.1 * jax.random.normal(kg, (1, n))
        beta = 0.1 * jax.random.normal(kb, (1, n))
        rmean = 0.1 * jax.random.normal(km, (1, n))
        rvar = 1.0 + 0.1 * jax.random.uniform(kv, (1, n))
        scale = gamma / jnp.sqrt(rvar + eps)
        shift = beta - rmean * scale
        return scale.astype(jnp.float32), shift.astype(jnp.float32)

    bn1_scale, bn1_shift = bn_fold(ks[6], ks[7], ks[8], ks[9], d_h1)
    k10, k11, k12, k13 = jax.random.split(ks[10], 4)
    bn2_scale, bn2_shift = bn_fold(k10, k11, k12, k13, d_h2)

    # final Linear(d_h2, 2), stored transposed (d_h2, 2)
    wf_t = kaiming_u(ks[11], (d_h2, 2), d_h2)
    bf = jnp.zeros((1, 2), jnp.float32)

    return dict(w1_t=w1_t, adj1=adj1, b1=b1, bn1_scale=bn1_scale, bn1_shift=bn1_shift,
                w2_t=w2_t, adj2=adj2, b2=b2, bn2_scale=bn2_scale, bn2_shift=bn2_shift,
                wf_t=wf_t, bf=bf)


# ------------------------------ references -----------------------------------
def reference(x, p):
    """Plain-JAX f32 eval-mode forward matching the PyTorch module (true softmax)."""
    h = x @ (p["w1_t"] * p["adj1"]) + p["b1"]
    h = jnp.maximum(h * p["bn1_scale"] + p["bn1_shift"], 0.0)
    h = h @ (p["w2_t"] * p["adj2"]) + p["b2"]
    h = jnp.maximum(h * p["bn2_scale"] + p["bn2_shift"], 0.0)
    logits = h @ p["wf_t"] + p["bf"]
    return jax.nn.softmax(logits, axis=1)


def reference_quantized(x, folded):
    """Reference applying the same bf16 quantization points as the kernel."""
    q = lambda a: a.astype(jnp.bfloat16).astype(jnp.float32)
    h = jnp.maximum(q(x) @ q(folded["w1"]) + folded["b1"], 0.0)
    h = jnp.maximum(q(h) @ q(folded["w2"]) + folded["b2"], 0.0)
    z = q(h) @ q(folded["wf"]) + folded["bf"]
    p1 = jax.nn.sigmoid(z)[:, 0]
    return jnp.stack([1.0 - p1, p1], axis=1)


if __name__ == "__main__":
    key = jax.random.PRNGKey(0)
    kx, kp = jax.random.split(key)

    # Small shapes consistent with the module: maps 32->16, 16->8, 2 classes.
    # B=10 exercises the pack-quantum pad and the tail slicing.
    B, D_IN, D_H1, D_H2 = 10, 32, 16, 8
    x = jax.random.normal(kx, (B, D_IN), jnp.float32)
    params = build_params(kp, D_IN, D_H1, D_H2)
    folded = fold_params(params)
    packed = pack_params(folded)

    out = clinical_benefit_clf(x, packed)
    out = jax.block_until_ready(out)
    assert out.shape == (B, 2)

    # (1) tight check vs a reference with identical bf16 quantization points
    ref_q = reference_quantized(x, folded)
    assert jnp.allclose(out, ref_q, atol=5e-3, rtol=0.0), (out, ref_q)
    # (2) check vs the true f32 module forward (bf16-level tolerance)
    ref_f32 = reference(x, params)
    assert jnp.allclose(out, ref_f32, atol=2e-2, rtol=0.0), (out, ref_f32)
    # (3) probabilities sum to 1 (exact up to one f32 rounding of p0 = 1 - p1)
    assert jnp.allclose(jnp.sum(out, axis=1), 1.0, atol=1e-6)

    print("KERNEL_OK")
</pallas_src>

<mosaic_0001>
module attributes {stable_mosaic.version = 11 : i64} {
  func.func @clf_kernel(%arg0: i32, %arg1: memref<8x256xf32, #tpu.memory_space<vmem>>, %arg2: memref<256x128xbf16, #tpu.memory_space<vmem>>, %arg3: memref<1x128xf32, #tpu.memory_space<vmem>>, %arg4: memref<128x64xbf16, #tpu.memory_space<vmem>>, %arg5: memref<1x64xf32, #tpu.memory_space<vmem>>, %arg6: memref<64x8xbf16, #tpu.memory_space<vmem>>, %arg7: memref<1x8xf32, #tpu.memory_space<vmem>>, %arg8: memref<8x8xf32, #tpu.memory_space<vmem>>) attributes {dimension_semantics = [#tpu.dimension_semantics<parallel>], iteration_bounds = array<i64: 1>, scalar_prefetch = 0 : i64, scratch_operands = 0 : i64, tpu.core_type = #tpu.core_type<tc>, window_params = [{transform_indices = @transform_0, window_bounds = array<i64: 8, 256>}, {pipeline_mode = #tpu.pipeline_mode<synchronous>, transform_indices = @transform_1, window_bounds = array<i64: 256, 128>}, {pipeline_mode = #tpu.pipeline_mode<synchronous>, transform_indices = @transform_2, window_bounds = array<i64: 1, 128>}, {pipeline_mode = #tpu.pipeline_mode<synchronous>, transform_indices = @transform_3, window_bounds = array<i64: 128, 64>}, {pipeline_mode = #tpu.pipeline_mode<synchronous>, transform_indices = @transform_4, window_bounds = array<i64: 1, 64>}, {pipeline_mode = #tpu.pipeline_mode<synchronous>, transform_indices = @transform_5, window_bounds = array<i64: 64, 8>}, {pipeline_mode = #tpu.pipeline_mode<synchronous>, transform_indices = @transform_6, window_bounds = array<i64: 1, 8>}, {transform_indices = @transform_7, window_bounds = array<i64: 8, 8>}]} {
    %c0 = arith.constant 0 : index
    %c0_0 = arith.constant 0 : index
    %0 = vector.load %arg1[%c0, %c0_0] : memref<8x256xf32, #tpu.memory_space<vmem>>, vector<8x256xf32>
    %1 = arith.truncf %0 : vector<8x256xf32> to vector<8x256xbf16>
    %c0_1 = arith.constant 0 : index
    %c0_2 = arith.constant 0 : index
    %2 = vector.load %arg2[%c0_1, %c0_2] : memref<256x128xbf16, #tpu.memory_space<vmem>>, vector<256x128xbf16>
    %cst = arith.constant dense<0.000000e+00> : vector<8x128xf32>
    %3 = tpu.matmul %1, %2, %cst {dimension_numbers = #tpu.dot_dimension_numbers<[1], [0], [0], [1], [0, 0, 1, 1], [], []>} : vector<8x256xbf16>, vector<256x128xbf16>, vector<8x128xf32> -> vector<8x128xf32>
    %c0_3 = arith.constant 0 : index
    %c0_4 = arith.constant 0 : index
    %4 = vector.load %arg3[%c0_3, %c0_4] : memref<1x128xf32, #tpu.memory_space<vmem>>, vector<1x128xf32>
    %5 = vector.broadcast %4 : vector<1x128xf32> to vector<8x128xf32>
    %6 = arith.addf %3, %5 : vector<8x128xf32>
    %cst_5 = arith.constant 0.000000e+00 : f32
    %7 = vector.broadcast %cst_5 : f32 to vector<8x128xf32>
    %8 = arith.maximumf %6, %7 : vector<8x128xf32>
    %9 = arith.truncf %8 : vector<8x128xf32> to vector<8x128xbf16>
    %c0_6 = arith.constant 0 : index
    %c0_7 = arith.constant 0 : index
    %10 = vector.load %arg4[%c0_6, %c0_7] : memref<128x64xbf16, #tpu.memory_space<vmem>>, vector<128x64xbf16>
    %cst_8 = arith.constant dense<0.000000e+00> : vector<8x64xf32>
    %11 = tpu.matmul %9, %10, %cst_8 {dimension_numbers = #tpu.dot_dimension_numbers<[1], [0], [0], [1], [0, 0, 1, 1], [], []>} : vector<8x128xbf16>, vector<128x64xbf16>, vector<8x64xf32> -> vector<8x64xf32>
    %c0_9 = arith.constant 0 : index
    %c0_10 = arith.constant 0 : index
    %12 = vector.load %arg5[%c0_9, %c0_10] : memref<1x64xf32, #tpu.memory_space<vmem>>, vector<1x64xf32>
    %13 = vector.broadcast %12 : vector<1x64xf32> to vector<8x64xf32>
    %14 = arith.addf %11, %13 : vector<8x64xf32>
    %cst_11 = arith.constant 0.000000e+00 : f32
    %15 = vector.broadcast %cst_11 : f32 to vector<8x64xf32>
    %16 = arith.maximumf %14, %15 : vector<8x64xf32>
    %17 = arith.truncf %16 : vector<8x64xf32> to vector<8x64xbf16>
    %c0_12 = arith.constant 0 : index
    %c0_13 = arith.constant 0 : index
    %18 = vector.load %arg6[%c0_12, %c0_13] : memref<64x8xbf16, #tpu.memory_space<vmem>>, vector<64x8xbf16>
    %cst_14 = arith.constant dense<0.000000e+00> : vector<8x8xf32>
    %19 = tpu.matmul %17, %18, %cst_14 {dimension_numbers = #tpu.dot_dimension_numbers<[1], [0], [0], [1], [0, 0, 1, 1], [], []>} : vector<8x64xbf16>, vector<64x8xbf16>, vector<8x8xf32> -> vector<8x8xf32>
    %c0_15 = arith.constant 0 : index
    %c0_16 = arith.constant 0 : index
    %20 = vector.load %arg7[%c0_15, %c0_16] : memref<1x8xf32, #tpu.memory_space<vmem>>, vector<1x8xf32>
    %21 = vector.broadcast %20 : vector<1x8xf32> to vector<8x8xf32>
    %22 = arith.addf %19, %21 : vector<8x8xf32>
    %23 = math.absf %22 : vector<8x8xf32>
    %cst_17 = arith.constant 0.000000e+00 : f32
    %24 = vector.broadcast %cst_17 : f32 to vector<8x8xf32>
    %25 = arith.subf %24, %23 : vector<8x8xf32>
    %26 = math.exp %25 : vector<8x8xf32>
    %cst_18 = arith.constant 0.000000e+00 : f32
    %27 = vector.broadcast %cst_18 : f32 to vector<8x8xf32>
    %28 = arith.cmpf oge, %22, %27 : vector<8x8xf32>
    %cst_19 = arith.constant 1.000000e+00 : f32
    %29 = vector.broadcast %cst_19 : f32 to vector<8x8xf32>
    %30 = arith.select %28, %29, %26 : vector<8x8xi1>, vector<8x8xf32>
    %cst_20 = arith.constant 1.000000e+00 : f32
    %31 = vector.broadcast %cst_20 : f32 to vector<8x8xf32>
    %32 = arith.addf %31, %26 : vector<8x8xf32>
    %33 = tpu.reciprocal %32 {approx = true} : vector<8x8xf32> -> vector<8x8xf32>
    %34 = arith.mulf %30, %33 : vector<8x8xf32>
    %c0_21 = arith.constant 0 : index
    %c0_22 = arith.constant 0 : index
    %35 = vector.load %arg8[%c0_21, %c0_22] : memref<8x8xf32, #tpu.memory_space<vmem>>, vector<8x8xf32>
    tpu.vector_store %arg8[%c0_21, %c0_22], %34 {strides = array<i32>} : memref<8x8xf32, #tpu.memory_space<vmem>>, vector<8x8xf32>,
    return
  }
  func.func @transform_0(%arg0: i32) -> (i32, i32) {
    %c0_i32 = arith.constant 0 : i32
    %c0_i32_0 = arith.constant 0 : i32
    return %arg0, %c0_i32 : i32, i32
  }
  func.func @transform_1(%arg0: i32) -> (i32, i32) {
    %c0_i32 = arith.constant 0 : i32
    %c0_i32_0 = arith.constant 0 : i32
    %c0_i32_1 = arith.constant 0 : i32
    return %c0_i32, %c0_i32_0 : i32, i32
  }
  func.func @transform_2(%arg0: i32) -> (i32, i32) {
    %c0_i32 = arith.constant 0 : i32
    %c0_i32_0 = arith.constant 0 : i32
    %c0_i32_1 = arith.constant 0 : i32
    return %c0_i32, %c0_i32_0 : i32, i32
  }
  func.func @transform_3(%arg0: i32) -> (i32, i32) {
    %c0_i32 = arith.constant 0 : i32
    %c0_i32_0 = arith.constant 0 : i32
    %c0_i32_1 = arith.constant 0 : i32
    return %c0_i32, %c0_i32_0 : i32, i32
  }
  func.func @transform_4(%arg0: i32) -> (i32, i32) {
    %c0_i32 = arith.constant 0 : i32
    %c0_i32_0 = arith.constant 0 : i32
    %c0_i32_1 = arith.constant 0 : i32
    return %c0_i32, %c0_i32_0 : i32, i32
  }
  func.func @transform_5(%arg0: i32) -> (i32, i32) {
    %c0_i32 = arith.constant 0 : i32
    %c0_i32_0 = arith.constant 0 : i32
    %c0_i32_1 = arith.constant 0 : i32
    return %c0_i32, %c0_i32_0 : i32, i32
  }
  func.func @transform_6(%arg0: i32) -> (i32, i32) {
    %c0_i32 = arith.constant 0 : i32
    %c0_i32_0 = arith.constant 0 : i32
    %c0_i32_1 = arith.constant 0 : i32
    return %c0_i32, %c0_i32_0 : i32, i32
  }
  func.func @transform_7(%arg0: i32) -> (i32, i32) {
    %c0_i32 = arith.constant 0 : i32
    %c0_i32_0 = arith.constant 0 : i32
    return %arg0, %c0_i32 : i32, i32
  }
}

</mosaic_0001>

<bundles_post_ra>
// kernel: tpu_custom_call.1
= control target key start
LH: loop header
LB: loop body
LE: loop exit
PB: predicated region body
PF: predicated region fallthrough
CT: control target
= control target key end

     0   :  { %12 = vsyncpa [#allocation3], 0  ;;  %s780_s0 = inlined_call_operand.hbm [shape: f32[8,256], index: 0, kind: input, shape index: {}]   ;;  %s781_s1 = inlined_call_operand.vmem [shape: bf16[256,128], index: 1, kind: input, shape index: {}]   ;;  %s782_s2 = inlined_call_operand.vmem [shape: f32[1,128], index: 2, kind: input, shape index: {}]   ;;  %s783_s3 = inlined_call_operand.vmem [shape: bf16[128,64], index: 3, kind: input, shape index: {}]   ;;  %s784_s4 = inlined_call_operand.vmem [shape: f32[1,64], index: 4, kind: input, shape index: {}]   ;;  %s785_s5 = inlined_call_operand.vmem [shape: bf16[64,8], index: 5, kind: input, shape index: {}]   ;;  %s786_s6 = inlined_call_operand.vmem [shape: f32[1,8], index: 6, kind: input, shape index: {}]   ;;  %s787_s7 = inlined_call_operand.hbm [shape: f32[8,8], index: 7, kind: output, shape index: {}]  }
   0x1   :  { %13 = vsyncpa [#allocation4], 0  ;;  %s623_s24 = smov [#allocation2]  }
   0x2   :  { %s20_s25 = sshll.u32 %s623_s24, 4  ;;  %s21_s25 = int_to_ptr.vmem [resolvable:$true] %s20_s25 }
   0x3   :  { %s587_s26 = scalar_lea.vmem %s21_s25, 256  ;;  %p592_p1 = scmp.lt.s32.totalorder %s21_s25, %s21_s25 }
   0x4   :  { %p588_p0 = scmp.ne.s32.totalorder %s21_s25, %s587_s26  ;;  %p593_p2 = scmp.lt.s32.totalorder %s587_s26, %s587_s26 }
   0x6   :  { %p594_p3 = por %p593_p2, %p592_p1 }
   0x8   :  { %p595_p4 = pnand %p594_p3, %p588_p0 }
   0xa   :  { %598 = shalt.err (!%p595_p4)
}
   0xb   :  { %23 = dma.hbm_to_vmem [thread:$0]  %s780_s0, 256, %s21_s25, [#allocation3]  }
   0xc   :  { %619 = dma.done.wait [#allocation3], 256  }
   0xd   :  { %620 = vsyncadd [#allocation3], 4294967040  ;;  %v624_v0 = vmov 0.0   ;;  %v547_v1 = vld [vmem:[%s781_s1 + $0x78] sm:$0xff]   ;;  %v549_v3 = vld [vmem:[%s781_s1 + $0x70] sm:$0xff]   ;;  %vm625_vm0 = vmmov 0  }
   0xe   :  { %511 = vmatprep.subr.bf16.mxu1 %v624_v0  ;;  %v548_v2 = vld [vmem:[%s781_s1 + $0x38] sm:$0xff]   ;;  %475 = vmatprep.subr.bf16.mxu0 %v547_v1  ;;  %v550_v4 = vld [vmem:[%s781_s1 + $0x30] sm:$0xff]   ;;  %v551_v5 = vld [vmem:[%s781_s1 + $0x68] sm:$0xff]   ;;  %vm373_vm1 = vcmask 523264   ;;  %vm426_vm3 = vcmask 64512  }
   0xf   :  { %476 = vmatpush3.bf16.msra.mxu0 %v548_v2  ;;  %v552_v6 = vld [vmem:[%s781_s1 + $0x28] sm:$0xff]   ;;  %v553_v7 = vld [vmem:[%s781_s1 + $0x60] sm:$0xff]   ;;  %v555_v9 = vld [vmem:[%s781_s1 + $0x58] sm:$0xff]   ;;  %527 = vmatprep.mubr.msk.bf16.mxu1 %vm625_vm0, %v624_v0 }
  0x10   :  { %477 = vmatprep.subr.bf16.mxu0 %v549_v3  ;;  %v554_v8 = vld [vmem:[%s781_s1 + $0x20] sm:$0xff]   ;;  %v556_v10 = vld [vmem:[%s781_s1 + $0x18] sm:$0xff]   ;;  %v557_v11 = vld [vmem:[%s781_s1 + $0x50] sm:$0xff]  }
  0x11   :  { %v41_v12 = vld [vmem:[#allocation2 + $0x8] sm:$0xff]  ;;  %v563_v14 = vld [vmem:[%s783_s3 + $0x38] sm:$0xff]   ;;  %v558_v15 = vld [vmem:[%s781_s1 + $0x10] sm:$0xff]  }
  0x12   :  { %v43_v13 = vpack.c.bf16 %v41_v12, %v41_v12  ;;  %v559_v16 = vld [vmem:[%s781_s1 + $0x48] sm:$0xff]   ;;  %512 = vmatpush3.bf16.msra.mxu1 %v563_v14  ;;  %v564_v17 = vld [vmem:[%s783_s3 + $0x30] sm:$0xff]   ;;  %v561_v19 = vld [vmem:[%s781_s1 + $0x40] sm:$0xff]  }
  0x13   :  { %478 = vmatpush3.bf16.msra.mxu0 %v550_v4  ;;  %v560_v18 = vld [vmem:[%s781_s1 + $0x8] sm:$0xff]   ;;  %513 = vmatprep.subr.bf16.mxu1 %v624_v0  ;;  %v562_v21 = vld [vmem:[%s781_s1] sm:$0xff]   ;;  %v567_v25 = vld [vmem:[%s783_s3 + $0x18] sm:$0xff]  }
  0x14   :  { %479 = vmatprep.subr.bf16.mxu0 %v551_v5  ;;  %211 = vmatprep.mubr.bf16.mxu0 %v43_v13  ;;  %v565_v20 = vld [vmem:[%s783_s3 + $0x28] sm:$0xff]   ;;  %v40_v22 = vld [vmem:[#allocation2] sm:$0xff]  ;;  %v568_v26 = vld [vmem:[%s783_s3 + $0x10] sm:$0xff]  }
  0x15   :  { %v566_v23 = vld [vmem:[%s783_s3 + $0x20] sm:$0xff]   ;;  %v42_v24 = vpack.c.bf16 %v40_v22, %v40_v22  ;;  %v569_v27 = vld [vmem:[%s783_s3 + $0x8] sm:$0xff]   ;;  %v571_v29 = vld [vmem:[%s785_s5 + $0x18] sm:$0xff]  }
  0x16   :  { %514 = vmatpush3.bf16.msra.mxu1 %v564_v17  ;;  %v570_v28 = vld [vmem:[%s783_s3] sm:$0xff]   ;;  %v572_v30 = vld [vmem:[%s785_s5 + $0x10] sm:$0xff]   ;;  %v573_v40 = vld [vmem:[%s785_s5 + $0x8] sm:$0xff]  }
  0x17   :  { %480 = vmatpush3.bf16.msra.mxu0 %v552_v6  ;;  %515 = vmatprep.subr.bf16.mxu1 %v624_v0  ;;  %v443_v32 = vld [vmem:[%s782_s2] ss:$0 sm:$0xff] }
  0x18   :  { %481 = vmatprep.subr.bf16.mxu0 %v553_v7  ;;  %v574_v41 = vld [vmem:[%s785_s5] sm:$0xff]  }
  0x19   :  { %v460_v42 = vld [vmem:[%s784_s4] ss:$0 sm:$0xff]  ;;  %s626_s4 = smov [#allocation5]  }
  0x1a   :  { %516 = vmatpush3.bf16.msra.mxu1 %v565_v20  ;;  %v469_v50 = vld [vmem:[%s786_s6] ss:$0 sm:$0xff]  ;;  %s434_s5 = sshll.u32 %s626_s4, 4  ;;  %s435_s5 = int_to_ptr.vmem [resolvable:$true] %s434_s5 }
  0x1b   :  { %482 = vmatpush3.bf16.msra.mxu0 %v554_v8  ;;  %517 = vmatprep.subr.bf16.mxu1 %v624_v0  ;;  %s599_s6 = scalar_lea.vmem %s435_s5, 128  ;;  %p604_p6 = scmp.lt.s32.totalorder %s435_s5, %s435_s5 }
  0x1c   :  { %483 = vmatprep.subr.bf16.mxu0 %v555_v9  ;;  %p600_p5 = scmp.ne.s32.totalorder %s435_s5, %s599_s6  ;;  %p605_p7 = scmp.lt.s32.totalorder %s599_s6, %s599_s6 }
  0x1e   :  { %518 = vmatpush3.bf16.msra.mxu1 %v566_v23  ;;  %p606_p8 = por %p605_p7, %p604_p6 }
  0x1f   :  { %484 = vmatpush3.bf16.msra.mxu0 %v556_v10  ;;  %519 = vmatprep.subr.bf16.mxu1 %v624_v0 }
  0x20   :  { %485 = vmatprep.subr.bf16.mxu0 %v557_v11  ;;  %p607_p9 = pnand %p606_p8, %p600_p5 }
  0x22   :  { %520 = vmatpush3.bf16.msra.mxu1 %v567_v25 }
  0x23   :  { %486 = vmatpush3.bf16.msra.mxu0 %v558_v15  ;;  %521 = vmatprep.subr.bf16.mxu1 %v624_v0 }
  0x24   :  { %487 = vmatprep.subr.bf16.mxu0 %v559_v16 }
  0x26   :  { %522 = vmatpush3.bf16.msra.mxu1 %v568_v26 }
  0x27   :  { %488 = vmatpush3.bf16.msra.mxu0 %v560_v18  ;;  %523 = vmatprep.subr.bf16.mxu1 %v624_v0 }
  0x28   :  { %489 = vmatprep.subr.bf16.mxu0 %v561_v19 }
  0x2a   :  { %524 = vmatpush3.bf16.msra.mxu1 %v569_v27 }
  0x2b   :  { %490 = vmatpush3.bf16.msra.mxu0 %v562_v21  ;;  %525 = vmatprep.subr.bf16.mxu1 %v624_v0 }
  0x2c   :  { %531 = vmatprep.subr.bf16.mxu0 %v624_v0 }
  0x2e   :  { %212 = vmatmul.mubr.bf16.vlgmr.msra.gmra.mxu0 %v42_v24  ;;  %526 = vmatpush3.bf16.msra.mxu1 %v570_v28 }
  0x2f   :  { %539 = vmatprep.mubr.msk.bf16.mxu0 %vm625_vm0, %v624_v0  ;;  %532 = vmatpush3.bf16.msra.mxu0 %v571_v29 }
  0x30   :  { %533 = vmatprep.subr.bf16.mxu0 %v624_v0 }
  0x33   :  { %534 = vmatpush3.bf16.msra.mxu0 %v572_v30 }
  0x34   :  { %535 = vmatprep.subr.bf16.mxu0 %v624_v0 }
  0x37   :  { %536 = vmatpush3.bf16.msra.mxu0 %v573_v40 }
  0x38   :  { %537 = vmatprep.subr.bf16.mxu0 %v624_v0 }
  0x3b   :  { %538 = vmatpush3.bf16.msra.mxu0 %v574_v41 }
  0xee   :  { %v491_v31 = vpop.f32.mrf.mxu0 }
  0xf0   :  { %v492_v33 = vpop.f32.mrf.mxu0 }
  0xf1   :  { %v493_v34 = vadd.f32 %v492_v33, %v491_v31 }
  0xf2   :  { %v494_v35 = vpop.f32.mrf.mxu0 }
  0xf3   :  { %v214_v36 = vadd.f32 %v493_v34, %v443_v32 }
  0xf4   :  { %v495_v37 = vpop.f32.mrf.mxu0 }
  0xf5   :  { %v219_v38 = vmax.f32 %v214_v36, 0.0 }
  0xf7   :  { %v220_v39 = vpack.c.bf16 %v219_v38, %v219_v38 }
  0xf9   :  { %528 = vmatmul.mubr.bf16.vlgmr.msra.gmra.mxu1 %v220_v39 }
 0x1b9   :  { %v326_v43 = vpop.f32.mrf.mxu1 }
 0x1ba   :  { %v327_v44 = vadd.f32 %v460_v42, %v326_v43 }
 0x1bb   :  { %v529_v45 = vpop.f32.mrf.mxu1 }
 0x1bc   :  { %v332_v46 = vmax.f32 %v327_v44, 0.0 }
 0x1bd   :  { %v329_v47 = vpop.f32.mrf.mxu1 }
 0x1be   :  { %v333_v48 = vpack.c.bf16 %v332_v46, %v332_v46 }
 0x1bf   :  { %v530_v49 = vpop.f32.mrf.mxu1 }
 0x1c0   :  { %540 = vmatmul.mubr.msk.bf16.vlgmr.msra.gmra.mxu0 %vm373_vm1, %v333_v48 }
 0x280   :  { %v411_v51 = vpop.f32.mrf.mxu0 }
 0x281   :  { %v412_v52 = vadd.f32 %v469_v50, %v411_v51 }
 0x282   :  { %v541_v53 = vpop.f32.mrf.mxu0 }
 0x283   :  { %v417_v54 = vand.u32 2147483647, %v412_v52  ;;  %vm421_vm2 = vcmp.ge.f32.partialorder %v412_v52, 0.0 }
 0x284   :  { %v414_v55 = vpop.f32.mrf.mxu0 }
 0x285   :  { %v418_v56 = vsub.f32 0.0, %v417_v54 }
 0x286   :  { %v542_v57 = vpop.f32.mrf.mxu0 }
 0x287   :  { %v419_v58 = vmul.f32 1.442695, %v418_v56 }
 0x289   :  { %575 = vpow2.f32 %v419_v58 }
 0x296   :  { %v576_v59 = vpop.eup %575 }
 0x297   :  { %v423_v60 = vadd.f32 1.0, %v576_v59  ;;  %v422_v62 = vsel %vm421_vm2, 1.0, %v576_v59 }
 0x299   :  { %577 = vrcp.f32 %v423_v60 }
 0x2a6   :  { %v578_v61 = vpop.eup %577 }
 0x2a7   :  { %v425_v63 = vmul.f32 %v578_v61, %v422_v62 }
 0x2a9   :  { %427 = vst.msk [vmem:[#allocation5] sm:$0xff] %vm426_vm3, %v425_v63 }
 0x2aa   :  { %610 = shalt.err (!%p607_p9)
}
 0x2ab   :  { %437 = dma.vmem_to_hbm [thread:$0]  %s435_s5, 128, %s787_s7, [#allocation4]  }
 0x2ac   :  { %621 = dma.done.wait [#allocation4], 128  }
 0x2ad   :  { %622 = vsyncadd [#allocation4], 4294967168 }
 0x2ae   :  { %441 = vsyncpa [#allocation3], 1 }
 0x2af   :  { %442 = vsyncpa [#allocation4], 1 }

</bundles_post_ra>
